<compile_context>
chip_gen: v7x
topology: tpu7x:2x2x1
jax: 0.10.0
libtpu: 0.0.40
codegen_flags: <defaults>
</compile_context>

<pallas_src>
import functools

import jax
import jax.numpy as jnp
from jax.experimental import pallas as pl
from jax.experimental.pallas import tpu as pltpu


def _cpila_kernel(x_ref, o_ref, *, k, a, b, c, m, compute_dtype):
    """x_ref: (T, HW) input block; o_ref: (T, 2, HW) output block."""
    x = x_ref[...].astype(compute_dtype)

    def pila_scaled(z):
        # Coefficients (a, b, c, m) already carry the 1/1.06 scaling.
        zn = jnp.minimum(z, 0.0)                 # keep exp() arg non-positive
        poly = ((a * zn + b) * zn + c) * zn      # (a*z^3 + b*z^2 + c*z) * scale
        neg = jnp.exp(k * zn) * poly
        pos = m * z                              # (1*z + 0) * scale
        return jnp.where(z > 0.0, pos, neg)

    y0 = pila_scaled(x - 0.2)                    # pila(x - 0.2) / 1.06
    y1 = pila_scaled(-x - 0.2)                   # pila(-x - 0.2) / 1.06
    # Lane-aligned half-stores: both halves start at lane 0 of the vreg.
    o_ref[:, 0, :] = y0.astype(o_ref.dtype)
    o_ref[:, 1, :] = y1.astype(o_ref.dtype)


def _compute_dtype_for(x_dtype):
    """bf16 compute on chips that support it (v6e/v7x); f32 everywhere else."""
    if x_dtype == jnp.bfloat16:
        try:
            kind = jax.devices()[0].device_kind.lower()
        except Exception:
            kind = ""
        if "v5 lite" in kind or "v5e" in kind or "v5lite" in kind:
            return jnp.float32           # v5e VPU/EUP lack bf16
        return jnp.bfloat16
    return jnp.float32


def _pick_block_rows(R, HW, itemsize):
    """Row-block heuristic: ~4 MiB input tiles, VMEM-capped, >=4 grid steps."""
    pack = {4: 8, 2: 16, 1: 32}.get(itemsize, 8)     # sublane packing per dtype
    row_bytes = max(1, HW * itemsize)

    def round_up(v, q):
        return -(-v // q) * q

    # Target ~4 MiB input tiles.
    target = max(pack, ((4 << 20) // row_bytes) // pack * pack)
    # Cap the double-buffered footprint (2*in + 2*out = 6*input tile) at ~40 MiB.
    vmem_cap = max(pack, ((40 << 20) // (6 * row_bytes)) // pack * pack)
    block_rows = min(target, vmem_cap)

    # Keep at least 4 grid steps when the problem is large enough (pipelining
    # overlap + megacore / 2-TC sharding on v7x); never exceed R (rounded up).
    if R >= 4 * pack:
        min_steps = 4
    elif R >= 2 * pack:
        min_steps = 2
    else:
        min_steps = 1
    block_rows = min(block_rows, round_up(-(-R // min_steps), pack))
    block_rows = min(block_rows, round_up(R, pack))
    return max(block_rows, pack)


def cpila(x, k=5, block_rows=None):
    """x: (N, C, H, W) -> (N, C, 2H, W), matching torch CPila.forward."""
    N, C, H, W = x.shape
    R, HW = N * C, H * W
    itemsize = jnp.dtype(x.dtype).itemsize
    x2 = x.reshape(R, HW)

    if block_rows is None:
        block_rows = _pick_block_rows(R, HW, itemsize)

    grid = (pl.cdiv(R, block_rows),)

    # Fold the /1.06 into the coefficients at trace time (compile-time
    # immediates; no extra per-element divide/mul in the kernel).
    scale = 1.0 / 1.06
    kf = float(k)
    a = (kf * kf / 2.0) * scale
    b = (-kf) * scale
    c = 1.0 * scale
    m = 1.0 * scale                              # d = 0, n = 0 drop out

    compute_dtype = _compute_dtype_for(x.dtype)
    kern = functools.partial(_cpila_kernel, k=kf, a=a, b=b, c=c, m=m,
                             compute_dtype=compute_dtype)

    # ~10-13 VPU ops + 1 exp per output element, 2 output elems per input.
    cost = pl.CostEstimate(
        flops=26 * R * HW,
        transcendentals=2 * R * HW,
        bytes_accessed=3 * R * HW * itemsize,
    )

    out = pl.pallas_call(
        kern,
        out_shape=jax.ShapeDtypeStruct((R, 2, HW), x.dtype),
        grid=grid,
        in_specs=[pl.BlockSpec((block_rows, HW), lambda i: (i, 0))],
        out_specs=pl.BlockSpec((block_rows, 2, HW), lambda i: (i, 0, 0)),
        compiler_params=pltpu.CompilerParams(
            dimension_semantics=("parallel",),
            vmem_limit_bytes=48 << 20,           # safe on v5e/v6e (128 MiB) & v7x (64 MiB)
        ),
        cost_estimate=cost,
    )(x2)

    # Contiguous reshape: (R, 2, HW) -> (N, C, 2H, W) reproduces cat(dim=2).
    return out.reshape(N, C, 2 * H, W)


# ----------------------- pure-JAX reference & test -------------------------

def _pila_reference(z, k):
    a = k * k / 2.0
    b = -k
    zn = jnp.minimum(z, 0.0)
    poly = ((a * zn + b) * zn + 1.0) * zn
    return jnp.where(z > 0.0, z, jnp.exp(k * zn) * poly)


def _cpila_reference(x, k=5):
    y = jnp.concatenate([x - 0.2, -x - 0.2], axis=2)
    return _pila_reference(y, float(k)) / 1.06


if __name__ == "__main__":
    key = jax.random.PRNGKey(0)
    x = jax.random.normal(key, (2, 4, 16, 16), dtype=jnp.float32)

    out = cpila(x, k=5)
    out = jax.block_until_ready(out)

    ref = _cpila_reference(x, k=5)
    assert out.shape == (2, 4, 32, 16), out.shape
    assert jnp.allclose(out, ref, atol=1e-5, rtol=1e-5), "mismatch vs reference"

    # Second shape: H*W not a multiple of 128 (exercises full-dim lane layout)
    # and R large enough to get a multi-step grid.
    x2 = jax.random.normal(jax.random.PRNGKey(1), (4, 16, 14, 14), dtype=jnp.float32)
    out2 = jax.block_until_ready(cpila(x2, k=5))
    ref2 = _cpila_reference(x2, k=5)
    assert out2.shape == (4, 16, 28, 14), out2.shape
    assert jnp.allclose(out2, ref2, atol=1e-5, rtol=1e-5), "mismatch (14x14) vs reference"

    print("KERNEL_OK")
</pallas_src>

<mosaic_0001>
module attributes {stable_mosaic.version = 11 : i64} {
  func.func @_cpila_kernel(%arg0: i32, %arg1: memref<8x256xf32, #tpu.memory_space<vmem>>, %arg2: memref<8x2x256xf32, #tpu.memory_space<vmem>>) attributes {dimension_semantics = [#tpu.dimension_semantics<parallel>], iteration_bounds = array<i64: 1>, scalar_prefetch = 0 : i64, scratch_operands = 0 : i64, tpu.core_type = #tpu.core_type<tc>, window_params = [{transform_indices = @transform_0, window_bounds = array<i64: 8, 256>}, {transform_indices = @transform_1, window_bounds = array<i64: 8, 2, 256>}]} {
    %c0 = arith.constant 0 : index
    %c0_0 = arith.constant 0 : index
    %0 = vector.load %arg1[%c0, %c0_0] : memref<8x256xf32, #tpu.memory_space<vmem>>, vector<8x256xf32>
    %cst = arith.constant 2.000000e-01 : f32
    %1 = vector.broadcast %cst : f32 to vector<8x256xf32>
    %2 = arith.subf %0, %1 : vector<8x256xf32>
    %cst_1 = arith.constant 0.000000e+00 : f32
    %3 = vector.broadcast %cst_1 : f32 to vector<8x256xf32>
    %4 = arith.minimumf %2, %3 : vector<8x256xf32>
    %cst_2 = arith.constant 11.7924528 : f32
    %5 = vector.broadcast %cst_2 : f32 to vector<8x256xf32>
    %6 = arith.mulf %5, %4 : vector<8x256xf32>
    %cst_3 = arith.constant -4.71698093 : f32
    %7 = vector.broadcast %cst_3 : f32 to vector<8x256xf32>
    %8 = arith.addf %6, %7 : vector<8x256xf32>
    %9 = arith.mulf %8, %4 : vector<8x256xf32>
    %cst_4 = arith.constant 0.94339621 : f32
    %10 = vector.broadcast %cst_4 : f32 to vector<8x256xf32>
    %11 = arith.addf %9, %10 : vector<8x256xf32>
    %12 = arith.mulf %11, %4 : vector<8x256xf32>
    %cst_5 = arith.constant 5.000000e+00 : f32
    %13 = vector.broadcast %cst_5 : f32 to vector<8x256xf32>
    %14 = arith.mulf %13, %4 : vector<8x256xf32>
    %15 = math.exp %14 : vector<8x256xf32>
    %16 = arith.mulf %15, %12 : vector<8x256xf32>
    %cst_6 = arith.constant 0.94339621 : f32
    %17 = vector.broadcast %cst_6 : f32 to vector<8x256xf32>
    %18 = arith.mulf %17, %2 : vector<8x256xf32>
    %cst_7 = arith.constant 0.000000e+00 : f32
    %19 = vector.broadcast %cst_7 : f32 to vector<8x256xf32>
    %20 = arith.cmpf ogt, %2, %19 : vector<8x256xf32>
    %21 = arith.select %20, %18, %16 : vector<8x256xi1>, vector<8x256xf32>
    %cst_8 = arith.constant 0.000000e+00 : f32
    %22 = vector.broadcast %cst_8 : f32 to vector<8x256xf32>
    %23 = arith.subf %22, %0 : vector<8x256xf32>
    %cst_9 = arith.constant 2.000000e-01 : f32
    %24 = vector.broadcast %cst_9 : f32 to vector<8x256xf32>
    %25 = arith.subf %23, %24 : vector<8x256xf32>
    %cst_10 = arith.constant 0.000000e+00 : f32
    %26 = vector.broadcast %cst_10 : f32 to vector<8x256xf32>
    %27 = arith.minimumf %25, %26 : vector<8x256xf32>
    %cst_11 = arith.constant 11.7924528 : f32
    %28 = vector.broadcast %cst_11 : f32 to vector<8x256xf32>
    %29 = arith.mulf %28, %27 : vector<8x256xf32>
    %cst_12 = arith.constant -4.71698093 : f32
    %30 = vector.broadcast %cst_12 : f32 to vector<8x256xf32>
    %31 = arith.addf %29, %30 : vector<8x256xf32>
    %32 = arith.mulf %31, %27 : vector<8x256xf32>
    %cst_13 = arith.constant 0.94339621 : f32
    %33 = vector.broadcast %cst_13 : f32 to vector<8x256xf32>
    %34 = arith.addf %32, %33 : vector<8x256xf32>
    %35 = arith.mulf %34, %27 : vector<8x256xf32>
    %cst_14 = arith.constant 5.000000e+00 : f32
    %36 = vector.broadcast %cst_14 : f32 to vector<8x256xf32>
    %37 = arith.mulf %36, %27 : vector<8x256xf32>
    %38 = math.exp %37 : vector<8x256xf32>
    %39 = arith.mulf %38, %35 : vector<8x256xf32>
    %cst_15 = arith.constant 0.94339621 : f32
    %40 = vector.broadcast %cst_15 : f32 to vector<8x256xf32>
    %41 = arith.mulf %40, %25 : vector<8x256xf32>
    %cst_16 = arith.constant 0.000000e+00 : f32
    %42 = vector.broadcast %cst_16 : f32 to vector<8x256xf32>
    %43 = arith.cmpf ogt, %25, %42 : vector<8x256xf32>
    %44 = arith.select %43, %41, %39 : vector<8x256xi1>, vector<8x256xf32>
    %c0_17 = arith.constant 0 : index
    %c0_18 = arith.constant 0 : index
    %c0_19 = arith.constant 0 : index
    %45 = vector.load %arg2[%c0_17, %c0_18, %c0_19] : memref<8x2x256xf32, #tpu.memory_space<vmem>>, vector<8x1x256xf32>
    %46 = vector.shape_cast %45 : vector<8x1x256xf32> to vector<8x256xf32>
    %47 = vector.shape_cast %21 : vector<8x256xf32> to vector<8x1x256xf32>
    tpu.vector_store %arg2[%c0_17, %c0_18, %c0_19], %47 {strides = array<i32>} : memref<8x2x256xf32, #tpu.memory_space<vmem>>, vector<8x1x256xf32>,
    %c0_20 = arith.constant 0 : index
    %c1 = arith.constant 1 : index
    %c0_21 = arith.constant 0 : index
    %48 = vector.load %arg2[%c0_20, %c1, %c0_21] : memref<8x2x256xf32, #tpu.memory_space<vmem>>, vector<8x1x256xf32>
    %49 = vector.shape_cast %48 : vector<8x1x256xf32> to vector<8x256xf32>
    %50 = vector.shape_cast %44 : vector<8x256xf32> to vector<8x1x256xf32>
    tpu.vector_store %arg2[%c0_20, %c1, %c0_21], %50 {strides = array<i32>} : memref<8x2x256xf32, #tpu.memory_space<vmem>>, vector<8x1x256xf32>,
    return
  }
  func.func @transform_0(%arg0: i32) -> (i32, i32) {
    %c0_i32 = arith.constant 0 : i32
    %c0_i32_0 = arith.constant 0 : i32
    return %arg0, %c0_i32 : i32, i32
  }
  func.func @transform_1(%arg0: i32) -> (i32, i32, i32) {
    %c0_i32 = arith.constant 0 : i32
    %c0_i32_0 = arith.constant 0 : i32
    %c0_i32_1 = arith.constant 0 : i32
    return %arg0, %c0_i32, %c0_i32_0 : i32, i32, i32
  }
}

</mosaic_0001>

<bundles_post_ra>
// kernel: tpu_custom_call.1
= control target key start
LH: loop header
LB: loop body
LE: loop exit
PB: predicated region body
PF: predicated region fallthrough
CT: control target
= control target key end

     0   :  { %6 = vsyncpa [#allocation3], 0  ;;  %s403_s0 = inlined_call_operand.hbm [shape: f32[8,256], index: 0, kind: input, shape index: {}]   ;;  %s404_s1 = inlined_call_operand.hbm [shape: f32[8,2,256], index: 1, kind: output, shape index: {}]  }
   0x1   :  { %7 = vsyncpa [#allocation4], 0  ;;  %s318_s6 = smov [#allocation2]   ;;  %s270_s10 = scalar_lea.hbm %s403_s0, 256 }
   0x2   :  { %s14_s7 = sshll.u32 %s318_s6, 4  ;;  %p271_p0 = scmp.ne.s32.totalorder %s403_s0, %s270_s10  ;;  %s15_s7 = int_to_ptr.vmem [resolvable:$true] %s14_s7 }
   0x3   :  { %p274_p1 = scmp.lt.u32.totalorder %s270_s10, %s403_s0 }
   0x5   :  { %p276_p2 = pnand %p274_p1, %p271_p0 }
   0x7   :  { %279 = shalt.err (!%p276_p2)
}
   0x8   :  { %s280_s15 = scalar_lea.vmem %s15_s7, 256  ;;  %p285_p4 = scmp.lt.s32.totalorder %s15_s7, %s15_s7 }
   0x9   :  { %p281_p3 = scmp.ne.s32.totalorder %s15_s7, %s280_s15  ;;  %p286_p5 = scmp.lt.s32.totalorder %s280_s15, %s280_s15 }
   0xb   :  { %p287_p6 = por %p286_p5, %p285_p4 }
   0xd   :  { %p288_p7 = pnand %p287_p6, %p281_p3 }
   0xf   :  { %291 = shalt.err (!%p288_p7)
}
  0x10   :  { %17 = dma.hbm_to_vmem [thread:$0]  %s403_s0, 256, %s15_s7, [#allocation3]  }
  0x11   :  { %314 = dma.done.wait [#allocation3], 256  }
  0x12   :  { %315 = vsyncadd [#allocation3], 4294967040  ;;  %v21_v0 = vld [vmem:[#allocation2] sm:$0xff]  ;;  %v22_v1 = vld [vmem:[#allocation2 + $0x8] sm:$0xff]  ;;  %v319_v34 = vmov 1966171168   ;;  %v88_v36 = vlaneseq }
  0x13   :  { %v253_v2 = vadd.f32 -0.2, %v21_v0  ;;  %v254_v3 = vadd.f32 -0.2, %v22_v1  ;;  %v51_v4 = vsub.f32 0.0, %v21_v0  ;;  %v52_v5 = vsub.f32 0.0, %v22_v1 }
  0x14   :  { %v86_v35 = vunpack.c.l.s4 %v319_v34  ;;  %v89_v43 = vshrl.u32 %v88_v36, 7  ;;  %vm355_vm4 = vcmp.lt.s32.totalorder %v88_v36, 256  ;;  %s320_s0 = smov [#allocation5]  }
  0x15   :  { %v25_v6 = vmin.f32 %v253_v2, 0.0  ;;  %v26_v7 = vmin.f32 %v254_v3, 0.0  ;;  %v345_v8 = vadd.f32 -0.2, %v51_v4  ;;  %v347_v9 = vadd.f32 -0.2, %v52_v5 }
  0x16   :  { %v45_v41 = vmul.f32 0.9433962, %v253_v2  ;;  %v87_v42 = vunpack.c.0.s8 %v86_v35  ;;  %v46_v45 = vmul.f32 0.9433962, %v254_v3  ;;  %vm47_vm0 = vcmp.gt.f32.partialorder %v253_v2, 0.0  ;;  %s241_s18 = sshll.u32 %s320_s0, 4  ;;  %s242_s18 = int_to_ptr.vmem [resolvable:$true] %s241_s18 }
  0x17   :  { %v27_v10 = vmul.f32 11.792453, %v25_v6  ;;  %v28_v11 = vmul.f32 11.792453, %v26_v7  ;;  %v37_v12 = vmul.f32 5.0, %v25_v6  ;;  %v38_v13 = vmul.f32 5.0, %v26_v7  ;;  %p297_p9 = scmp.lt.s32.totalorder %s242_s18, %s242_s18 }
  0x18   :  { %v55_v14 = vmin.f32 %v345_v8, 0.0  ;;  %v56_v15 = vmin.f32 %v347_v9, 0.0  ;;  %vm48_vm1 = vcmp.gt.f32.partialorder %v254_v3, 0.0  ;;  %v90_v52 = vsub.s32 %v87_v42, %v89_v43  ;;  %s292_s19 = scalar_lea.vmem %s242_s18, 512 }
  0x19   :  { %v29_v16 = vadd.f32 -4.716981, %v27_v10  ;;  %v30_v17 = vadd.f32 -4.716981, %v28_v11  ;;  %v39_v18 = vmul.f32 1.442695, %v37_v12  ;;  %p293_p8 = scmp.ne.s32.totalorder %s242_s18, %s292_s19  ;;  %p298_p10 = scmp.lt.s32.totalorder %s292_s19, %s292_s19 }
  0x1a   :  { %v41_v19 = vmul.f32 1.442695, %v38_v13  ;;  %v57_v20 = vmul.f32 11.792453, %v55_v14  ;;  %v58_v21 = vmul.f32 11.792453, %v56_v15 }
  0x1b   :  { %v31_v22 = vmul.f32 %v29_v16, %v25_v6  ;;  %v32_v23 = vmul.f32 %v30_v17, %v26_v7  ;;  %262 = vpow2.f32 %v39_v18  ;;  %v67_v24 = vmul.f32 5.0, %v55_v14  ;;  %p299_p11 = por %p298_p10, %p297_p9 }
  0x1c   :  { %264 = vpow2.f32 %v41_v19  ;;  %v59_v25 = vadd.f32 -4.716981, %v57_v20  ;;  %v60_v26 = vadd.f32 -4.716981, %v58_v21  ;;  %v68_v27 = vmul.f32 5.0, %v56_v15 }
  0x1d   :  { %v69_v28 = vmul.f32 1.442695, %v67_v24  ;;  %v33_v29 = vadd.f32 0.9433962, %v31_v22  ;;  %v34_v32 = vadd.f32 0.9433962, %v32_v23  ;;  %p300_p12 = pnand %p299_p11, %p293_p8 }
  0x1e   :  { %v61_v30 = vmul.f32 %v59_v25, %v55_v14  ;;  %v71_v31 = vmul.f32 1.442695, %v68_v27  ;;  %v62_v33 = vmul.f32 %v60_v26, %v56_v15  ;;  %v75_v53 = vmul.f32 0.9433962, %v345_v8 }
  0x1f   :  { %266 = vpow2.f32 %v69_v28  ;;  %v35_v37 = vmul.f32 %v33_v29, %v25_v6  ;;  %v36_v39 = vmul.f32 %v34_v32, %v26_v7  ;;  %v76_v56 = vmul.f32 0.9433962, %v347_v9 }
  0x20   :  { %268 = vpow2.f32 %v71_v31  ;;  %v63_v38 = vadd.f32 0.9433962, %v61_v30  ;;  %v64_v40 = vadd.f32 0.9433962, %v62_v33  ;;  %vm77_vm2 = vcmp.gt.f32.partialorder %v345_v8, 0.0 }
  0x21   :  { %vm78_vm3 = vcmp.gt.f32.partialorder %v347_v9, 0.0 }
  0x22   :  { %v65_v48 = vmul.f32 %v63_v38, %v55_v14  ;;  %v66_v50 = vmul.f32 %v64_v40, %v56_v15 }
  0x25   :  { %v263_v44 = vpop.eup %262 }
  0x26   :  { %v265_v46 = vpop.eup %264  ;;  %v43_v47 = vmul.f32 %v263_v44, %v35_v37 }
  0x27   :  { %v44_v49 = vmul.f32 %v265_v46, %v36_v39 }
  0x28   :  { %v49_v51 = vsel %vm47_vm0, %v45_v41, %v43_v47 }
  0x29   :  { %v267_v54 = vpop.eup %266  ;;  %v50_v55 = vsel %vm48_vm1, %v46_v45, %v44_v49 }
  0x2a   :  { %v269_v57 = vpop.eup %268  ;;  %v83_v58 = vcombine.low %v49_v51, %v50_v55  ;;  %v84_v59 = vcombine.high %v49_v51, %v50_v55  ;;  %v73_v60 = vmul.f32 %v267_v54, %v65_v48 }
  0x2b   :  { %v74_v61 = vmul.f32 %v269_v57, %v66_v50 }
  0x2c   :  { %v91_v62 = vrot.slane %v83_v58, %v90_v52  ;;  %v98_v63 = vrot.slane %v84_v59, %v90_v52  ;;  %v79_v0 = vsel %vm77_vm2, %v75_v53, %v73_v60 }
  0x2d   :  { %v80_v2 = vsel %vm78_vm3, %v76_v56, %v74_v61 }
  0x2e   :  { %v107_v3 = vrot.slane %v91_v62, %v90_v52  ;;  %v99_v4 = vcombine.high %v91_v62, %v91_v62  ;;  %v114_v5 = vrot.slane %v98_v63, %v90_v52  ;;  %v100_v6 = vcombine.high %v98_v63, %v98_v63 }
  0x2f   :  { %v162_v7 = vcombine.low %v79_v0, %v80_v2  ;;  %v163_v8 = vcombine.high %v79_v0, %v80_v2 }
  0x30   :  { %145 = vst.msk [vmem:[#allocation5] ss:$2 sm:$0x3] %vm355_vm4, %v107_v3  ;;  %v121_v10 = vrot.slane %v99_v4, %v90_v52  ;;  %v129_v9 = vcombine.high %v107_v3, %v107_v3  ;;  %153 = vst.msk [vmem:[#allocation5 + $0x10] ss:$2 sm:$0x3] %vm355_vm4, %v114_v5  ;;  %v128_v11 = vrot.slane %v100_v6, %v90_v52 }
  0x31   :  { %v130_v12 = vcombine.high %v114_v5, %v114_v5  ;;  %v170_v13 = vrot.slane %v162_v7, %v90_v52  ;;  %v177_v14 = vrot.slane %v163_v8, %v90_v52 }
  0x32   :  { %147 = vst.msk [vmem:[#allocation5 + $0x4] ss:$2 sm:$0x3] %vm355_vm4, %v121_v10  ;;  %149 = vst.msk [vmem:[#allocation5 + $0x8] ss:$2 sm:$0x3] %vm355_vm4, %v129_v9  ;;  %v131_v15 = vcombine.high %v121_v10, %v121_v10  ;;  %v132_v16 = vcombine.high %v128_v11, %v128_v11 }
  0x33   :  { %155 = vst.msk [vmem:[#allocation5 + $0x14] ss:$2 sm:$0x3] %vm355_vm4, %v128_v11  ;;  %157 = vst.msk [vmem:[#allocation5 + $0x18] ss:$2 sm:$0x3] %vm355_vm4, %v130_v12  ;;  %v186_v17 = vrot.slane %v170_v13, %v90_v52  ;;  %v178_v18 = vcombine.high %v170_v13, %v170_v13  ;;  %v193_v19 = vrot.slane %v177_v14, %v90_v52 }
  0x34   :  { %v179_v20 = vcombine.high %v177_v14, %v177_v14  ;;  %151 = vst.msk [vmem:[#allocation5 + $0xc] ss:$2 sm:$0x3] %vm355_vm4, %v131_v15  ;;  %159 = vst.msk [vmem:[#allocation5 + $0x1c] ss:$2 sm:$0x3] %vm355_vm4, %v132_v16 }
  0x35   :  { %221 = vst.msk [vmem:[#allocation5 + $0x1] ss:$2 sm:$0x3] %vm355_vm4, %v186_v17  ;;  %v200_v21 = vrot.slane %v178_v18, %v90_v52  ;;  %v208_v22 = vcombine.high %v186_v17, %v186_v17  ;;  %229 = vst.msk [vmem:[#allocation5 + $0x11] ss:$2 sm:$0x3] %vm355_vm4, %v193_v19  ;;  %v209_v24 = vcombine.high %v193_v19, %v193_v19 }
  0x36   :  { %v207_v23 = vrot.slane %v179_v20, %v90_v52 }
  0x37   :  { %223 = vst.msk [vmem:[#allocation5 + $0x5] ss:$2 sm:$0x3] %vm355_vm4, %v200_v21  ;;  %225 = vst.msk [vmem:[#allocation5 + $0x9] ss:$2 sm:$0x3] %vm355_vm4, %v208_v22  ;;  %v210_v25 = vcombine.high %v200_v21, %v200_v21 }
  0x38   :  { %231 = vst.msk [vmem:[#allocation5 + $0x15] ss:$2 sm:$0x3] %vm355_vm4, %v207_v23  ;;  %233 = vst.msk [vmem:[#allocation5 + $0x19] ss:$2 sm:$0x3] %vm355_vm4, %v209_v24  ;;  %v211_v26 = vcombine.high %v207_v23, %v207_v23 }
  0x39   :  { %227 = vst.msk [vmem:[#allocation5 + $0xd] ss:$2 sm:$0x3] %vm355_vm4, %v210_v25 }
  0x3a   :  { %235 = vst.msk [vmem:[#allocation5 + $0x1d] ss:$2 sm:$0x3] %vm355_vm4, %v211_v26 }
  0x3b   :  { %303 = shalt.err (!%p300_p12)
}
  0x3c   :  { %s304_s22 = scalar_lea.hbm %s404_s1, 512 }
  0x3d   :  { %p305_p13 = scmp.ne.s32.totalorder %s404_s1, %s304_s22  ;;  %p308_p0 = scmp.lt.u32.totalorder %s304_s22, %s404_s1 }
  0x3f   :  { %p310_p1 = pnand %p308_p0, %p305_p13 }
  0x41   :  { %313 = shalt.err (!%p310_p1)
}
  0x42   :  { %s321_s27 = smov 64   ;;  %s322_s28 = smov 4  }
  0x43   :  { %247 = dma.vmem_to_hbm [thread:$0]  %s242_s18, 512, %s404_s1, [#allocation4], %s321_s27, %s321_s27, %s322_s28  }
  0x44   :  { %316 = dma.done.wait [#allocation4], 512  }
  0x45   :  { %317 = vsyncadd [#allocation4], 4294966784 }
  0x46   :  { %251 = vsyncpa [#allocation3], 1 }
  0x47   :  { %252 = vsyncpa [#allocation4], 1 }

</bundles_post_ra>
